<compile_context>
chip_gen: v7x
topology: tpu7x:2x2x1
jax: 0.10.0
libtpu: 0.0.40
codegen_flags: <defaults>
</compile_context>

<pallas_src>
import jax
import jax.numpy as jnp
from jax.experimental import pallas as pl
from jax.experimental.pallas import tpu as pltpu


def _round_up(n, m):
    return ((n + m - 1) // m) * m


def _largest_divisor_tile(n, target, align=128):
    """Largest t <= target with t % align == 0 and n % t == 0 (n is align-multiple)."""
    target = max(align, min(target, n))
    start = target - (target % align)
    for t in range(start, align - 1, -align):
        if n % t == 0:
            return t
    return n


# ---------------------------------------------------------------------------
# Kernels
# ---------------------------------------------------------------------------
def _encode_decode(x_ref, enc_ref, dec_ref, scale_ref, gate_b_ref, mag_b_ref):
    # Encoder chunk: (TB, TD) = x @ W_enc.T[:, k_tile]   (MXU, natural (M,K)x(K,N))
    y = jnp.dot(x_ref[...], enc_ref[...], preferred_element_type=jnp.float32)
    # Gated / magnitude nonlinearity (decoder_bias & exp(r_mag) pre-folded into
    # the bias rows -> single select + FMA on the VPU, no exp in-kernel).
    f = jnp.where(y + gate_b_ref[...] > 0.0,
                  jnp.maximum(scale_ref[...] * y + mag_b_ref[...], 0.0),
                  0.0)
    # Decoder partial sum: (TB, D_act) = f @ W_dec.T[k_tile, :]
    return jnp.dot(f.astype(dec_ref.dtype), dec_ref[...],
                   preferred_element_type=jnp.float32)


def gated_sae_kernel_f32out(x_ref, enc_ref, dec_ref, dec_b_ref,
                            scale_ref, gate_b_ref, mag_b_ref, out_ref):
    # f32 output: accumulate directly into the resident output block (no scratch).
    k = pl.program_id(1)
    part = _encode_decode(x_ref, enc_ref, dec_ref, scale_ref, gate_b_ref, mag_b_ref)

    @pl.when(k == 0)
    def _():
        out_ref[...] = dec_b_ref[...] + part      # write, don't zero-then-add

    @pl.when(k > 0)
    def _():
        out_ref[...] += part


def gated_sae_kernel_scratch(x_ref, enc_ref, dec_ref, dec_b_ref,
                             scale_ref, gate_b_ref, mag_b_ref, out_ref, acc_ref):
    # Non-f32 output: accumulate in a f32 VMEM scratch, cast once at the end.
    k = pl.program_id(1)
    nk = pl.num_programs(1)
    part = _encode_decode(x_ref, enc_ref, dec_ref, scale_ref, gate_b_ref, mag_b_ref)

    @pl.when(k == 0)
    def _():
        acc_ref[...] = dec_b_ref[...] + part

    @pl.when(k > 0)
    def _():
        acc_ref[...] += part

    @pl.when(k == nk - 1)
    def _():
        out_ref[...] = acc_ref[...].astype(out_ref.dtype)


# ---------------------------------------------------------------------------
# One-time parameter preparation (hoisted out of the per-call wrapper)
# ---------------------------------------------------------------------------
def prepare_gated_sae_params(enc_w, dec_w, decoder_bias, r_mag, gate_bias,
                             mag_bias, *, matmul_dtype=None):
    """Pad, transpose and bias-fold the (static) parameters ONCE.

    enc_w: (D_dict, D_act)  encoder.weight (PyTorch layout)
    dec_w: (D_act, D_dict)  decoder.weight (PyTorch layout)
    decoder_bias: (D_act,); r_mag / gate_bias / mag_bias: (D_dict,)
    matmul_dtype: optional dtype (e.g. jnp.bfloat16) to cast the weight
      matrices to once, for full-rate MXU / halved weight HBM traffic.
    """
    D_dict, D_act = enc_w.shape
    d_act_p = _round_up(D_act, 128)
    d_dict_p = _round_up(D_dict, 128)
    w_dtype = enc_w.dtype if matmul_dtype is None else jnp.dtype(matmul_dtype)

    # Fold decoder_bias / exp(r_mag) into encoder-side bias rows (exact algebra):
    #   x_enc = (x - b_dec) @ W_enc.T = x @ W_enc.T - b_enc,  b_enc = W_enc @ b_dec
    b_enc = enc_w.astype(jnp.float32) @ decoder_bias.astype(jnp.float32)  # (D_dict,)
    scale = jnp.exp(r_mag.astype(jnp.float32))
    gate_b = gate_bias.astype(jnp.float32) - b_enc
    mag_b = mag_bias.astype(jnp.float32) - scale * b_enc

    def pad2(a, r, c):
        if a.shape == (r, c):
            return a
        return jnp.zeros((r, c), a.dtype).at[:a.shape[0], :a.shape[1]].set(a)

    def pad_row(v, n):
        row = v.reshape(1, -1).astype(jnp.float32)
        if row.shape[1] == n:
            return row
        return jnp.zeros((1, n), jnp.float32).at[:, :row.shape[1]].set(row)

    # Pre-transposed, padded weights (MXU-natural (K, N) layouts, zero padding).
    # Padded dict units have zero weights and gate_b'=0 -> pi_gate=0 (not >0) ->
    # they gate closed and contribute nothing: padding is numerically exact.
    enc_wT = pad2(enc_w.T.astype(w_dtype), d_act_p, d_dict_p)   # (D_act_p, D_dict_p)
    dec_wT = pad2(dec_w.T.astype(w_dtype), d_dict_p, d_act_p)   # (D_dict_p, D_act_p)

    return dict(
        enc_wT=enc_wT,
        dec_wT=dec_wT,
        dec_b=pad_row(decoder_bias, d_act_p),
        scale=pad_row(scale, d_dict_p),
        gate_b=pad_row(gate_b, d_dict_p),
        mag_b=pad_row(mag_b, d_dict_p),
        d_act=D_act, d_dict=D_dict, d_act_p=d_act_p, d_dict_p=d_dict_p,
    )


# ---------------------------------------------------------------------------
# Forward wrapper
# ---------------------------------------------------------------------------
def gated_autoencoder_forward(x, params, *, tb=None, td=None, out_dtype=None):
    """GatedAutoEncoder.forward (output_features=False) on prepared params.

    x: (B, D_act).  tb / td: batch / dict tile targets (auto-sized by default).
    out_dtype: output dtype (defaults to x.dtype).
    """
    B, D_act = x.shape
    assert D_act == params["d_act"], "activation_dim mismatch with prepared params"
    d_act_p = params["d_act_p"]
    d_dict_p = params["d_dict_p"]
    out_dtype = jnp.dtype(x.dtype) if out_dtype is None else jnp.dtype(out_dtype)
    use_scratch = out_dtype != jnp.float32

    # --- tile selection, sized against per-chip VMEM (64 MiB on v7x) ---------
    tb_target = 512 if tb is None else int(tb)      # v6e: large tb -> MXU-bound
    td_target = 1024 if td is None else int(td)     # fewer accumulator passes
    tb_ = max(8, min(_round_up(tb_target, 8), _round_up(B, 8)))
    td_ = _largest_divisor_tile(d_dict_p, td_target, 128)

    try:
        vmem_cap = int(pltpu.get_tpu_info().vmem_capacity_bytes)
    except Exception:  # pragma: no cover - conservative fallback
        vmem_cap = 64 << 20
    budget = int(vmem_cap * 0.75)                    # ~25% headroom

    isz_x = jnp.dtype(x.dtype).itemsize
    isz_w = jnp.dtype(params["enc_wT"].dtype).itemsize
    isz_o = out_dtype.itemsize

    def vmem_need(tb_c, td_c):
        dbl = 2 * (tb_c * d_act_p * isz_x            # x tile (double-buffered)
                   + d_act_p * td_c * isz_w          # encoder tile
                   + td_c * d_act_p * isz_w          # decoder tile
                   + tb_c * d_act_p * isz_o          # output tile
                   + (d_act_p + 3 * td_c) * 4)       # bias rows (f32)
        scr = tb_c * d_act_p * 4 if use_scratch else 0
        return dbl + scr

    while vmem_need(tb_, td_) > budget and (td_ > 128 or tb_ > 64):
        if td_ > 128:
            td_ = _largest_divisor_tile(d_dict_p, td_ // 2, 128)
        else:
            tb_ = max(64, _round_up(tb_ // 2, 8))

    b_p = _round_up(B, tb_)
    grid = (b_p // tb_, d_dict_p // td_)
    vmem_limit = int(min(budget, max(int(1.25 * vmem_need(tb_, td_)), 16 << 20)))

    # --- pad only the activations (fast path: no copy when already aligned) --
    if (B, D_act) == (b_p, d_act_p):
        x_p = x
    else:
        x_p = jnp.zeros((b_p, d_act_p), x.dtype).at[:B, :D_act].set(x)

    kernel = gated_sae_kernel_scratch if use_scratch else gated_sae_kernel_f32out
    scratch = ([pltpu.VMEM((tb_, d_act_p), jnp.float32)] if use_scratch else [])

    out_p = pl.pallas_call(
        kernel,
        out_shape=jax.ShapeDtypeStruct((b_p, d_act_p), out_dtype),
        grid_spec=pltpu.PrefetchScalarGridSpec(
            num_scalar_prefetch=0,
            grid=grid,
            in_specs=[
                pl.BlockSpec((tb_, d_act_p), lambda i, k: (i, 0)),   # x
                pl.BlockSpec((d_act_p, td_), lambda i, k: (0, k)),   # W_enc.T (padded)
                pl.BlockSpec((td_, d_act_p), lambda i, k: (k, 0)),   # W_dec.T (padded)
                pl.BlockSpec((1, d_act_p), lambda i, k: (0, 0)),     # decoder_bias
                pl.BlockSpec((1, td_), lambda i, k: (0, k)),         # exp(r_mag)
                pl.BlockSpec((1, td_), lambda i, k: (0, k)),         # gate_bias (folded)
                pl.BlockSpec((1, td_), lambda i, k: (0, k)),         # mag_bias (folded)
            ],
            out_specs=pl.BlockSpec((tb_, d_act_p), lambda i, k: (i, 0)),
            scratch_shapes=scratch,
        ),
        compiler_params=pltpu.CompilerParams(
            dimension_semantics=("parallel", "arbitrary"),
            vmem_limit_bytes=vmem_limit,
        ),
    )(x_p, params["enc_wT"], params["dec_wT"], params["dec_b"],
      params["scale"], params["gate_b"], params["mag_b"])

    if (B, D_act) == (b_p, d_act_p):
        return out_p
    return out_p[:B, :D_act]


# ---------------------------------------------------------------------------
# Reference (matches the PyTorch module's forward, output_features=False)
# ---------------------------------------------------------------------------
def reference_forward(x, enc_w, dec_w, decoder_bias, r_mag, gate_bias, mag_bias):
    x_c = x - decoder_bias[None, :]
    x_enc = x_c @ enc_w.T
    pi_gate = x_enc + gate_bias[None, :]
    f_gate = (pi_gate > 0).astype(jnp.float32)
    pi_mag = jnp.exp(r_mag)[None, :] * x_enc + mag_bias[None, :]
    f_mag = jnp.maximum(pi_mag, 0.0)
    f = f_gate * f_mag
    return f @ dec_w.T + decoder_bias[None, :]


def _check(got, ref, name, max_tol=5e-2, mean_tol=1e-3):
    assert got.shape == ref.shape, f"{name}: shape {got.shape} != {ref.shape}"
    diff = jnp.abs(got.astype(jnp.float32) - ref)
    mx, mn = float(diff.max()), float(diff.mean())
    assert mx < max_tol and mn < mean_tol, \
        f"{name}: mismatch vs reference (max abs err {mx}, mean abs err {mn})"


if __name__ == "__main__":
    key = jax.random.PRNGKey(0)
    k_x, k_enc, k_dec, k_db, k_rm, k_gb, k_mb = jax.random.split(key, 7)

    # Small but non-aligned shapes: exercises padding, a multi-block grid with
    # split-K accumulation along D_dict and multiple parallel batch blocks.
    B, D_act, D_dict = 24, 48, 320

    x = jax.random.normal(k_x, (B, D_act), dtype=jnp.float32)
    enc_w = 0.1 * jax.random.normal(k_enc, (D_dict, D_act), dtype=jnp.float32)
    dec_w = jax.random.normal(k_dec, (D_act, D_dict), dtype=jnp.float32)
    dec_w = dec_w / jnp.linalg.norm(dec_w, axis=0, keepdims=True)
    # _reset_parameters zeros these; use small non-zero values so the gating,
    # exp and bias-folding paths are actually exercised.
    decoder_bias = 0.05 * jax.random.normal(k_db, (D_act,), dtype=jnp.float32)
    r_mag = 0.05 * jax.random.normal(k_rm, (D_dict,), dtype=jnp.float32)
    gate_bias = 0.1 * jax.random.normal(k_gb, (D_dict,), dtype=jnp.float32)
    mag_bias = 0.1 * jax.random.normal(k_mb, (D_dict,), dtype=jnp.float32)

    ref = reference_forward(x, enc_w, dec_w, decoder_bias, r_mag, gate_bias, mag_bias)

    # One-time parameter prep (padding / transpose / bias folding hoisted here).
    params = prepare_gated_sae_params(enc_w, dec_w, decoder_bias, r_mag,
                                      gate_bias, mag_bias)

    # 1) Small explicit tiles -> grid (3, 3): multi-step accumulation on the
    #    f32 direct-into-output path.
    out1 = jax.block_until_ready(
        gated_autoencoder_forward(x, params, tb=8, td=128))
    _check(out1, ref, "small tiles / f32 direct-accumulate")

    # 2) Default (auto-sized) tiles, clamped to the small padded shapes.
    out2 = jax.block_until_ready(gated_autoencoder_forward(x, params))
    _check(out2, ref, "default tiles")

    # 3) Non-f32 output dtype -> f32 VMEM scratch accumulator path.
    out3 = jax.block_until_ready(
        gated_autoencoder_forward(x, params, tb=8, td=128,
                                  out_dtype=jnp.bfloat16))
    _check(out3, ref, "bf16 output / scratch accumulator",
           max_tol=6e-2, mean_tol=5e-3)

    print("KERNEL_OK")
</pallas_src>

<mosaic_0001>
module attributes {stable_mosaic.version = 11 : i64} {
  func.func @gated_sae_kernel_f32out(%arg0: i32, %arg1: i32, %arg2: memref<8x128xf32, #tpu.memory_space<vmem>>, %arg3: memref<128x128xf32, #tpu.memory_space<vmem>>, %arg4: memref<128x128xf32, #tpu.memory_space<vmem>>, %arg5: memref<1x128xf32, #tpu.memory_space<vmem>>, %arg6: memref<1x128xf32, #tpu.memory_space<vmem>>, %arg7: memref<1x128xf32, #tpu.memory_space<vmem>>, %arg8: memref<1x128xf32, #tpu.memory_space<vmem>>, %arg9: memref<8x128xf32, #tpu.memory_space<vmem>>) attributes {dimension_semantics = [#tpu.dimension_semantics<parallel>, #tpu.dimension_semantics<arbitrary>], iteration_bounds = array<i64: 3, 3>, scalar_prefetch = 0 : i64, scratch_operands = 0 : i64, tpu.core_type = #tpu.core_type<tc>, window_params = [{transform_indices = @transform_0, window_bounds = array<i64: 8, 128>}, {transform_indices = @transform_1, window_bounds = array<i64: 128, 128>}, {transform_indices = @transform_2, window_bounds = array<i64: 128, 128>}, {pipeline_mode = #tpu.pipeline_mode<synchronous>, transform_indices = @transform_3, window_bounds = array<i64: 1, 128>}, {transform_indices = @transform_4, window_bounds = array<i64: 1, 128>}, {transform_indices = @transform_5, window_bounds = array<i64: 1, 128>}, {transform_indices = @transform_6, window_bounds = array<i64: 1, 128>}, {transform_indices = @transform_7, window_bounds = array<i64: 8, 128>}]} {
    %c0 = arith.constant 0 : index
    %c0_0 = arith.constant 0 : index
    %0 = vector.load %arg2[%c0, %c0_0] : memref<8x128xf32, #tpu.memory_space<vmem>>, vector<8x128xf32>
    %c0_1 = arith.constant 0 : index
    %c0_2 = arith.constant 0 : index
    %1 = vector.load %arg3[%c0_1, %c0_2] : memref<128x128xf32, #tpu.memory_space<vmem>>, vector<128x128xf32>
    %cst = arith.constant dense<0.000000e+00> : vector<8x128xf32>
    %2 = tpu.matmul %0, %1, %cst {dimension_numbers = #tpu.dot_dimension_numbers<[1], [0], [0], [1], [0, 0, 1, 1], [], []>} : vector<8x128xf32>, vector<128x128xf32>, vector<8x128xf32> -> vector<8x128xf32>
    %c0_3 = arith.constant 0 : index
    %c0_4 = arith.constant 0 : index
    %3 = vector.load %arg7[%c0_3, %c0_4] : memref<1x128xf32, #tpu.memory_space<vmem>>, vector<1x128xf32>
    %4 = vector.broadcast %3 : vector<1x128xf32> to vector<8x128xf32>
    %5 = arith.addf %2, %4 : vector<8x128xf32>
    %cst_5 = arith.constant 0.000000e+00 : f32
    %6 = vector.broadcast %cst_5 : f32 to vector<8x128xf32>
    %7 = arith.cmpf ogt, %5, %6 : vector<8x128xf32>
    %c0_6 = arith.constant 0 : index
    %c0_7 = arith.constant 0 : index
    %8 = vector.load %arg6[%c0_6, %c0_7] : memref<1x128xf32, #tpu.memory_space<vmem>>, vector<1x128xf32>
    %9 = vector.broadcast %8 : vector<1x128xf32> to vector<8x128xf32>
    %10 = arith.mulf %9, %2 : vector<8x128xf32>
    %c0_8 = arith.constant 0 : index
    %c0_9 = arith.constant 0 : index
    %11 = vector.load %arg8[%c0_8, %c0_9] : memref<1x128xf32, #tpu.memory_space<vmem>>, vector<1x128xf32>
    %12 = vector.broadcast %11 : vector<1x128xf32> to vector<8x128xf32>
    %13 = arith.addf %10, %12 : vector<8x128xf32>
    %cst_10 = arith.constant 0.000000e+00 : f32
    %14 = vector.broadcast %cst_10 : f32 to vector<8x128xf32>
    %15 = arith.maximumf %13, %14 : vector<8x128xf32>
    %cst_11 = arith.constant 0.000000e+00 : f32
    %16 = vector.broadcast %cst_11 : f32 to vector<8x128xf32>
    %17 = arith.select %7, %15, %16 : vector<8x128xi1>, vector<8x128xf32>
    %c0_12 = arith.constant 0 : index
    %c0_13 = arith.constant 0 : index
    %18 = vector.load %arg4[%c0_12, %c0_13] : memref<128x128xf32, #tpu.memory_space<vmem>>, vector<128x128xf32>
    %cst_14 = arith.constant dense<0.000000e+00> : vector<8x128xf32>
    %19 = tpu.matmul %17, %18, %cst_14 {dimension_numbers = #tpu.dot_dimension_numbers<[1], [0], [0], [1], [0, 0, 1, 1], [], []>} : vector<8x128xf32>, vector<128x128xf32>, vector<8x128xf32> -> vector<8x128xf32>
    %c0_i32 = arith.constant 0 : i32
    %20 = arith.cmpi eq, %arg1, %c0_i32 : i32
    %21 = arith.extui %20 : i1 to i32
    %c0_i32_15 = arith.constant 0 : i32
    %22 = arith.cmpi ne, %21, %c0_i32_15 : i32
    scf.if %22 {
      %c0_18 = arith.constant 0 : index
      %c0_19 = arith.constant 0 : index
      %26 = vector.load %arg5[%c0_18, %c0_19] : memref<1x128xf32, #tpu.memory_space<vmem>>, vector<1x128xf32>
      %27 = vector.broadcast %26 : vector<1x128xf32> to vector<8x128xf32>
      %28 = arith.addf %27, %19 : vector<8x128xf32>
      %c0_20 = arith.constant 0 : index
      %c0_21 = arith.constant 0 : index
      %29 = vector.load %arg9[%c0_20, %c0_21] : memref<8x128xf32, #tpu.memory_space<vmem>>, vector<8x128xf32>
      tpu.vector_store %arg9[%c0_20, %c0_21], %28 {strides = array<i32>} : memref<8x128xf32, #tpu.memory_space<vmem>>, vector<8x128xf32>,
    } else {
    }
    %c0_i32_16 = arith.constant 0 : i32
    %23 = arith.cmpi sgt, %arg1, %c0_i32_16 : i32
    %24 = arith.extui %23 : i1 to i32
    %c0_i32_17 = arith.constant 0 : i32
    %25 = arith.cmpi ne, %24, %c0_i32_17 : i32
    scf.if %25 {
      %c0_18 = arith.constant 0 : index
      %c0_19 = arith.constant 0 : index
      %26 = vector.load %arg9[%c0_18, %c0_19] : memref<8x128xf32, #tpu.memory_space<vmem>>, vector<8x128xf32>
      %27 = arith.addf %26, %19 : vector<8x128xf32>
      %c0_20 = arith.constant 0 : index
      %c0_21 = arith.constant 0 : index
      %28 = vector.load %arg9[%c0_20, %c0_21] : memref<8x128xf32, #tpu.memory_space<vmem>>, vector<8x128xf32>
      tpu.vector_store %arg9[%c0_20, %c0_21], %27 {strides = array<i32>} : memref<8x128xf32, #tpu.memory_space<vmem>>, vector<8x128xf32>,
    } else {
    }
    return
  }
  func.func @transform_0(%arg0: i32, %arg1: i32) -> (i32, i32) {
    %c0_i32 = arith.constant 0 : i32
    %c0_i32_0 = arith.constant 0 : i32
    return %arg0, %c0_i32 : i32, i32
  }
  func.func @transform_1(%arg0: i32, %arg1: i32) -> (i32, i32) {
    %c0_i32 = arith.constant 0 : i32
    %c0_i32_0 = arith.constant 0 : i32
    return %c0_i32, %arg1 : i32, i32
  }
  func.func @transform_2(%arg0: i32, %arg1: i32) -> (i32, i32) {
    %c0_i32 = arith.constant 0 : i32
    %c0_i32_0 = arith.constant 0 : i32
    return %arg1, %c0_i32 : i32, i32
  }
  func.func @transform_3(%arg0: i32, %arg1: i32) -> (i32, i32) {
    %c0_i32 = arith.constant 0 : i32
    %c0_i32_0 = arith.constant 0 : i32
    %c0_i32_1 = arith.constant 0 : i32
    return %c0_i32, %c0_i32_0 : i32, i32
  }
  func.func @transform_4(%arg0: i32, %arg1: i32) -> (i32, i32) {
    %c0_i32 = arith.constant 0 : i32
    %c0_i32_0 = arith.constant 0 : i32
    return %c0_i32, %arg1 : i32, i32
  }
  func.func @transform_5(%arg0: i32, %arg1: i32) -> (i32, i32) {
    %c0_i32 = arith.constant 0 : i32
    %c0_i32_0 = arith.constant 0 : i32
    return %c0_i32, %arg1 : i32, i32
  }
  func.func @transform_6(%arg0: i32, %arg1: i32) -> (i32, i32) {
    %c0_i32 = arith.constant 0 : i32
    %c0_i32_0 = arith.constant 0 : i32
    return %c0_i32, %arg1 : i32, i32
  }
  func.func @transform_7(%arg0: i32, %arg1: i32) -> (i32, i32) {
    %c0_i32 = arith.constant 0 : i32
    %c0_i32_0 = arith.constant 0 : i32
    return %arg0, %c0_i32 : i32, i32
  }
}

</mosaic_0001>

<bundles_post_ra>
// kernel: tpu_custom_call.1
= control target key start
LH: loop header
LB: loop body
LE: loop exit
PB: predicated region body
PF: predicated region fallthrough
CT: control target
= control target key end

     0   :  { %s1790_s0 = inlined_call_operand.hbm [shape: f32[24,128], index: 0, kind: input, shape index: {}]   ;;  %s1791_s1 = inlined_call_operand.hbm [shape: f32[128,384], index: 1, kind: input, shape index: {}]   ;;  %s1792_s2 = inlined_call_operand.hbm [shape: f32[384,128], index: 2, kind: input, shape index: {}]   ;;  %s1793_s3 = inlined_call_operand.vmem [shape: f32[1,128], index: 3, kind: input, shape index: {}]   ;;  %s1794_s4 = inlined_call_operand.vmem [shape: f32[1,384], index: 4, kind: input, shape index: {}]   ;;  %s1795_s5 = inlined_call_operand.vmem [shape: f32[1,384], index: 5, kind: input, shape index: {}]   ;;  %s1796_s6 = inlined_call_operand.vmem [shape: f32[1,384], index: 6, kind: input, shape index: {}]   ;;  %s1797_s7 = inlined_call_operand.hbm [shape: f32[24,128], index: 7, kind: output, shape index: {}]  }
   0x1   :  { %1810 = sst [smem:[#allocation19_spill]] %s1791_s1 }
   0x2   :  { %1811 = sst [smem:[#allocation20_spill]] %s1793_s3 }
   0x3   :  { %1812 = sst [smem:[#allocation21_spill]] %s1794_s4 }
   0x4   :  { %1813 = sst [smem:[#allocation22_spill]] %s1795_s5 }
   0x5   :  { %1814 = sst [smem:[#allocation23_spill]] %s1796_s6 }
   0x6   :  { %1815 = sst [smem:[#allocation24_spill]] %s1797_s7 }
   0x7   :  { %12 = vsyncpa [#allocation3], 0 }
   0x8   :  { %14 = vsyncpa [#allocation3 + $0x1], 0 }
   0x9   :  { %15 = vsyncpa [#allocation6], 0 }
   0xa   :  { %17 = vsyncpa [#allocation6 + $0x1], 0 }
   0xb   :  { %18 = vsyncpa [#allocation4], 0 }
   0xc   :  { %20 = vsyncpa [#allocation4 + $0x1], 0  ;;  %s1376_s24 = smov 0   ;;  %s1378_s25 = smov 0  }
   0xd   :  { %s1380_s26 = smov 0   ;;  %s1382_s27 = smov 0  }
   0xe   :  { %s1384_s28 = smov 0   ;;  %s1386_s29 = smov 0  }
   0xf   :  { %s1388_s30 = smov 0   ;;  %s1390_s8 = smov 0  }
  0x10   :  { %s1392_s9 = smov 0   ;;  %s1394_s10 = smov 0  }
  0x11   :  { %s1396_s11 = smov 0  }
  0x12 LB: > { %1816 = sst [smem:[#allocation12_spill]] %s1304_s29  ;;  %p53_p0 = scmp.eq.s32.totalorder %s1324_s11, 0  ;;  %s1324_s11 = sphi %s1396_s11, %s26_s11   ;;  %s1320_s10 = sphi %s1394_s10, %s1854_s10   ;;  %s1316_s9 = sphi %s1392_s9, %s1861_s9   ;;  %s1312_s8 = sphi %s1390_s8, %s1852_s8   ;;  %s1308_s30 = sphi %s1388_s30, %s1860_s30   ;;  %s1304_s29 = sphi %s1386_s29, %s1851_s29   ;;  %s1300_s28 = sphi %s1384_s28, %s1859_s28   ;;  %s1296_s27 = sphi %s1382_s27, %s1858_s27   ;;  %s1292_s26 = sphi %s1380_s26, %s1857_s26   ;;  %s1288_s25 = sphi %s1378_s25, %s1856_s25   ;;  %s1284_s24 = sphi %s1376_s24, %s1855_s24  }
  0x13   : > { %1817 = sst [smem:[#allocation13_spill]] %s1312_s8  ;;  %p78_p1 = scmp.ne.s32.totalorder %s1292_s26, %s1288_s25 }
  0x14   : > { %1818 = sst [smem:[#allocation14_spill]] %s1320_s10  ;;  %p1799_p2 = scmp.lt.s32.totalorder %s1324_s11, 9 }
  0x15   : > { %s280_s13 = sand.u32 1, %s1324_s11   ;;  %p80_p3 = por %p78_p1, %p53_p0 }
  0x16   : > { %s282_s14 = sand.u32 1, %s1292_s26   ;;  %s817_s15 = sshll.u32 %s1316_s9, 7 }
  0x17   : > { %s1441_s16 = sshll.u32 %s282_s14, 7  ;;  %s1819_s1 = sld [smem:[#allocation19_spill]] }
  0x18   : > { %p1450_p4 = pnand %p1799_p2, %p80_p3  ;;  %s284_s21 = scalar_lea.vmem [#allocation5], %s1441_s16 }
  0x19   : > { %s290_s22 = sshll.u32 %s284_s21, 4  ;;  %s1457_s23 = scalar_lea.sflag [#allocation6], %s280_s13  ;;  %s1455_s22 = int_to_ptr.vmem [resolvable:$true] %s290_s22 }
  0x1a   : > { %p1803_p6 = pneg %p1450_p4 }
  0x1d   : > { %s1446_s19 = scalar_lea.hbm %s1819_s1, %s817_s15  ;;  %s1113_s18 = scalar_lea.hbm %s1819_s1, 6144 }
  0x1e   : > { %s1108_s14 = scalar_lea.hbm %s1446_s19, 2048  ;;  %p1114_p9 = scmp.lt.u32.totalorder %s1446_s19, %s1819_s1 }
  0x1f   : > { %p1109_p5 = scmp.ne.s32.totalorder %s1446_s19, %s1108_s14  ;;  %p1115_p10 = scmp.lt.u32.totalorder %s1113_s18, %s1108_s14 }
  0x20   : > { %p1117_p12 = scmp.lt.u32.totalorder %s1108_s14, %s1446_s19 }
  0x21   : > { %p1111_p7 = pnand %p1803_p6, %p1109_p5  ;;  %p1116_p11 = por %p1115_p10, %p1114_p9 }
  0x23   : > { %p1112_p8 = pneg %p1111_p7  ;;  %p1118_p13 = por %p1117_p12, %p1116_p11 }
  0x25   : > { %p1119_p1 = pnand %p1118_p13, %p1112_p8 }
  0x27   : > { %1122 = shalt.err (!%p1119_p1)
}
  0x28   : > { %s1123_s13 = scalar_lea.vmem %s1455_s22, 2048  ;;  %s1326_s21 = smov [#allocation5]  }
  0x29   : > { %p1124_p3 = scmp.ne.s32.totalorder %s1455_s22, %s1123_s13  ;;  %s1128_s15 = sshll.u32 %s1326_s21, 4  ;;  %s1129_s15 = int_to_ptr.vmem [resolvable:$false] %s1128_s15 }
  0x2a   : > { %s1130_s7 = scalar_lea.vmem %s1129_s15, 4096  ;;  %p1131_p2 = scmp.lt.s32.totalorder %s1455_s22, %s1129_s15 }
  0x2b   : > { %p1126_p5 = pnand %p1124_p3, %p1803_p6  ;;  %p1132_p9 = scmp.lt.s32.totalorder %s1130_s7, %s1123_s13 }
  0x2d   : > { %p1127_p7 = pneg %p1126_p5  ;;  %p1133_p10 = por %p1132_p9, %p1131_p2 }
  0x2f   : > { %p1134_p11 = pnand %p1133_p10, %p1127_p7 }
  0x31   : > { %1137 = shalt.err (!%p1134_p11)
}
  0x32   : > { %s1327_s12 = smov 384   ;;  %s1800_s14 = smov 128  }
  0x33   : > { %s1801_s17 = smov 8   ;;  %p821_p2 = scmp.ge.s32.totalorder %s1324_s11, 1 }
  0x34   : > { %1004 = dma.hbm_to_vmem [thread:$0]  (!%p1450_p4), %s1446_s19, 2048, %s1455_s22, %s1457_s23, %s1327_s12, %s1800_s14, %s1801_s17  }
  0x35   : > { %p337_p8 = scmp.lt.s32.totalorder %s1324_s11, 10  ;;  %s1494_s13 = sadd.s32 4294967295, %s1324_s11  }
  0x36   : > { %s811_s21 = sadd.s32 4294967294, %s1324_s11   ;;  %s35_s15 = sadd.s32 1, %s1316_s9 }
  0x37   : > { %p1489_p12 = pnand %p821_p2, %p337_p8  ;;  %p36_p13 = scmp.ge.s32.totalorder %s35_s15, 3 }
  0x38   : > { %s38_s7 = sadd.s32 1, %s1320_s10  ;;  %s45_s19 = sadd.s32 1, %s1304_s29 }
  0x39   : > { %s1821_s18 = scalar_select %p1489_p12, 1, 0 }
  0x3a   : > { %p52_p1 = scmp.ne.s32.totalorder %s1304_s29, %s1300_s28  ;;  %s1863_s15 = smov (%p36_p13, %s35_s15), 0 }
  0x3b   : > { %1822 = sst [smem:[#allocation15_spill]] %s1863_s15  ;;  %s1865_s7 = smov (!%p36_p13, %s38_s7), %s1320_s10 }
  0x3c   : > { %p1510_p3 = por %p53_p0, %p52_p1  ;;  %p58_p5 = scmp.ne.s32.totalorder %s1300_s28, %s1296_s27 }
  0x3d   : > { %p40_p7 = scmp.ge.s32.totalorder %s1865_s7, 3  ;;  %p59_p9 = scmp.eq.s32.totalorder %s1494_s13, 0 }
  0x3e   : > { %s68_s12 = ssub.s32 %s1316_s9, %s1863_s15  ;;  %p84_p10 = scmp.ne.s32.totalorder %s1288_s25, %s1284_s24 }
  0x3f   : > { %s1867_s7 = smov (%p40_p7, %s1865_s7), 0  ;;  %p1526_p11 = por %p59_p9, %p58_p5 }
  0x40   : > { %1824 = sst [smem:[#allocation16_spill]] %s1867_s7  ;;  %p69_p0 = scmp.eq.s32.totalorder %s68_s12, 0 }
  0x41   : > { %s1825_s14 = scalar_select %p1526_p11, 1, 0 }
  0x42   : > { %s42_s17 = ssub.s32 %s1320_s10, %s1867_s7  ;;  %p1532_p2 = por %p84_p10, %p59_p9 }
  0x43   : > { %p43_p8 = scmp.eq.s32.totalorder %s42_s17, 0  ;;  %p233_p13 = scmp.eq.s32.totalorder %s1494_s13, 8 }
  0x44   : > { %s1826_s1 = scalar_select %p1532_p2, 1, 0 }
  0x45   : > { %s1827_s15 = sadd.s32 1, %s1292_s26  ;;  %p1548_p7 = por %p233_p13, %p52_p1 }
  0x46   : > { %s1540_s24 = scalar_select %p69_p0, %s1292_s26, %s1827_s15  }
  0x47   : > { %s1543_s8 = scalar_select %p43_p8, %s1304_s29, %s45_s19  }
  0x48   : > { %1828 = sst [smem:[#allocation17_spill]] %s1540_s24  ;;  %p239_p6 = scmp.eq.s32.totalorder %s811_s21, 8 }
  0x49   : > { %1829 = sst [smem:[#allocation18_spill]] %s1543_s8  ;;  %s262_s6 = sand.u32 1, %s1304_s29  }
  0x4a   : > { %s1830_s3 = scalar_select %p1548_p7, 1, 0 }
  0x4b   : > { %s815_s12 = sshll.u32 %s1320_s10, 7  ;;  %p1557_p9 = por %p239_p6, %p58_p5 }
  0x4c   : > { %s814_s17 = sshll.u32 %s262_s6, 3  ;;  %s1564_s15 = scalar_lea.hbm %s1790_s0, %s815_s12 }
  0x4d   : > { %s1831_s7 = scalar_select %p1557_p9, 1, 0 }
  0x4e   : > { %p1832_p10 = scmp.lt.s32.totalorder %s1324_s11, 9  ;;  %s266_s19 = scalar_lea.vmem [#allocation2], %s814_s17 }
  0x4f   : > { %s273_s10 = sshll.u32 %s266_s19, 4  ;;  %s263_s8 = scalar_lea.sflag [#allocation3], %s262_s6  ;;  %s1574_s10 = int_to_ptr.vmem [resolvable:$true] %s273_s10 }
  0x50   : > { %p1570_p1 = pnand %p1832_p10, %p1510_p3  ;;  %s1138_s4 = scalar_lea.hbm %s1564_s15, 128 }
  0x51   : > { %p1139_p6 = scmp.ne.s32.totalorder %s1564_s15, %s1138_s4  ;;  %s1143_s12 = scalar_lea.hbm %s1790_s0, 384 }
  0x52   : > { %p1140_p5 = pneg %p1570_p1  ;;  %p1144_p3 = scmp.lt.u32.totalorder %s1564_s15, %s1790_s0 }
  0x53   : > { %p1145_p13 = scmp.lt.u32.totalorder %s1143_s12, %s1138_s4  ;;  %p1147_p9 = scmp.lt.u32.totalorder %s1138_s4, %s1564_s15 }
  0x54   : > { %p1141_p0 = pnand %p1140_p5, %p1139_p6 }
  0x55   : > { %p1146_p10 = por %p1145_p13, %p1144_p3 }
  0x56   : > { %p1142_p8 = pneg %p1141_p0 }
  0x57   : > { %p1148_p7 = por %p1147_p9, %p1146_p10 }
  0x59   : > { %p1149_p2 = pnand %p1148_p7, %p1142_p8 }
  0x5b   : > { %1152 = shalt.err (!%p1149_p2)
}
  0x5c   : > { %s1153_s6 = scalar_lea.vmem %s1574_s10, 128  ;;  %s1330_s17 = smov [#allocation2]  }
  0x5d   : > { %p1154_p6 = scmp.ne.s32.totalorder %s1574_s10, %s1153_s6  ;;  %s1158_s19 = sshll.u32 %s1330_s17, 4  ;;  %s1159_s19 = int_to_ptr.vmem [resolvable:$false] %s1158_s19 }
  0x5e   : > { %s1160_s29 = scalar_lea.vmem %s1159_s19, 256  ;;  %p1161_p12 = scmp.lt.s32.totalorder %s1574_s10, %s1159_s19 }
  0x5f   : > { %p1156_p0 = pnand %p1154_p6, %p1140_p5  ;;  %p1162_p3 = scmp.lt.s32.totalorder %s1160_s29, %s1153_s6 }
  0x61   : > { %p1157_p11 = pneg %p1156_p0  ;;  %p1163_p13 = por %p1162_p3, %p1161_p12 }
  0x63   : > { %p1164_p9 = pnand %p1163_p13, %p1157_p11 }
  0x65   : > { %1167 = shalt.err (!%p1164_p9)
}
  0x66   : > { %1001 = dma.hbm_to_vmem [thread:$0]  (!%p1570_p1), %s1564_s15, 128, %s1574_s10, %s263_s8  }
  0x67   : > { %s837_s24 = sshll.u32 %s1316_s9, 11  ;;  %s304_s4 = scalar_lea.vmem [#allocation7], %s1441_s16 }
  0x68   : > { %s311_s5 = sshll.u32 %s304_s4, 4  ;;  %s1606_s17 = scalar_lea.hbm %s1792_s2, %s837_s24  ;;  %s1608_s5 = int_to_ptr.vmem [resolvable:$true] %s311_s5 }
  0x69   : > { %s1168_s21 = scalar_lea.hbm %s1606_s17, 2048  ;;  %p1834_p11 = pneg %p1450_p4 }
  0x6a   : > { %p1169_p12 = scmp.ne.s32.totalorder %s1606_s17, %s1168_s21  ;;  %s1173_s16 = scalar_lea.hbm %s1792_s2, 6144 }
  0x6b   : > { %p1174_p1 = scmp.lt.u32.totalorder %s1606_s17, %s1792_s2  ;;  %p1175_p5 = scmp.lt.u32.totalorder %s1173_s16, %s1168_s21 }
  0x6c   : > { %p1171_p2 = pnand %p1169_p12, %p1834_p11  ;;  %p1177_p10 = scmp.lt.u32.totalorder %s1168_s21, %s1606_s17 }
  0x6d   : > { %p1176_p8 = por %p1175_p5, %p1174_p1 }
  0x6e   : > { %p1172_p7 = pneg %p1171_p2 }
  0x6f   : > { %p1178_p6 = por %p1177_p10, %p1176_p8 }
  0x71   : > { %p1179_p0 = pnand %p1178_p6, %p1172_p7 }
  0x73   : > { %1182 = shalt.err (!%p1179_p0)
}
  0x74   : > { %s1183_s19 = scalar_lea.vmem %s1608_s5, 2048  ;;  %p1835_p13 = pmov %p1834_p11 }
  0x75   : > { %p1184_p3 = scmp.ne.s32.totalorder %s1608_s5, %s1183_s19  ;;  %s1331_s29 = smov [#allocation7]  }
  0x76   : > { %s1188_s24 = sshll.u32 %s1331_s29, 4  ;;  %s1189_s24 = int_to_ptr.vmem [resolvable:$false] %s1188_s24 }
  0x77   : > { %p1186_p9 = pnand %p1184_p3, %p1835_p13  ;;  %s1190_s4 = scalar_lea.vmem %s1189_s24, 4096 }
  0x78   : > { %p1191_p11 = scmp.lt.s32.totalorder %s1608_s5, %s1189_s24  ;;  %p1192_p2 = scmp.lt.s32.totalorder %s1190_s4, %s1183_s19 }
  0x79   : > { %p1187_p12 = pneg %p1186_p9 }
  0x7a   : > { %p1193_p1 = por %p1192_p2, %p1191_p11 }
  0x7c   : > { %p1194_p5 = pnand %p1193_p1, %p1187_p12 }
  0x7e   : > { %1197 = shalt.err (!%p1194_p5)
}
  0x7f   : > { %s1836_s22 = smov 8   ;;  %s1837_s12 = smov 128  }
  0x80   : > { %1007 = dma.hbm_to_vmem [thread:$0]  (!%p1450_p4), %s1606_s17, 2048, %s1608_s5, %s1457_s23, %s1837_s12, %s1837_s12, %s1836_s22  }
  0x81   : > { %p1838_p7 = scmp.ne.s32.totalorder %s1821_s18, 0 }
  0x82   : > { %s1640_s21 = sand.u32 (!%p1838_p7), 1, %s1300_s28   ;;  %p1839_p8 = scmp.ne.s32.totalorder (!%p1838_p7), %s1825_s14, 0 }
  0x83   : > { %341 = sbr.rel (%p1838_p7) target bundleno = 648 (0x288), region = 48  ;;  %s822_s8 = sshll.u32 (!%p1838_p7), %s1640_s21, 3 }
  0x84   : > { %s344_s10 = scalar_lea.sflag (!%p1838_p7), [#allocation3], %s1640_s21  ;;  %s1646_s20 = scalar_lea.vmem (!%p1838_p7), [#allocation2], %s822_s8 }
  0x8a   : > { %1271 = dma.done.wait (%p1839_p8), %s344_s10, 128  }
  0x8b   : > { %1273 = vsyncadd (%p1839_p8), %s344_s10, 4294967168  ;;  %s352_s23 = sand.u32 1, %s1494_s13   ;;  %s354_s18 = sand.u32 1, %s1288_s25  }
  0x8c   : > { %s823_s5 = sshll.u32 %s354_s18, 7  ;;  %s353_s17 = scalar_lea.sflag [#allocation6], %s352_s23 }
  0x8d   : > { %s1654_s16 = scalar_lea.vmem [#allocation5], %s823_s5  ;;  %p1840_p4 = scmp.ne.s32.totalorder %s1826_s1, 0 }
  0x8f   : > { %1275 = dma.done.wait (%p1840_p4), %s353_s17, 4096  }
  0x90   : > { %1277 = vsyncadd (%p1840_p4), %s353_s17, 4294963200  ;;  %v1332_v0 = vmov 0.0|0.0   ;;  %vm1333_vm0 = vmmov 0   ;;  %v1334_v1 = vmov 0.0   ;;  %v426_v2 = vld [vmem:[%s1654_s16] sm:$0xff]  ;;  %v427_v3 = vld [vmem:[%s1654_s16 + $0x8] sm:$0xff] }
  0x91   : > { %942 = vmatprep.subr.bf16.mxu0 %v1332_v0  ;;  %904 = vmatprep.mubr.msk.f32.mxu0 %vm1333_vm0, %v1334_v1  ;;  %v428_v4 = vld [vmem:[%s1654_s16 + $0x10] sm:$0xff]  ;;  %v943_v5 = vpack.c.bf16 %v427_v3, %v426_v2  ;;  %v429_v6 = vld [vmem:[%s1654_s16 + $0x18] sm:$0xff]  ;;  %v430_v8 = vld [vmem:[%s1654_s16 + $0x20] sm:$0xff]  ;;  %s1669_s1 = scalar_lea.vmem [#allocation7], %s823_s5  ;;  %p416_p10 = scmp.lt.s32.totalorder %s1308_s30, 2 }
  0x92   : > { %966 = vmatprep.subr.bf16.mxu1 %v1332_v0  ;;  %939 = vmatprep.mubr.msk.f32.mxu1 %vm1333_vm0, %v1334_v1  ;;  %v946_v7 = vpack.c.bf16 %v429_v6, %v428_v4  ;;  %v431_v9 = vld [vmem:[%s1654_s16 + $0x28] sm:$0xff]  ;;  %v539_v10 = vld [vmem:[%s1669_s1] sm:$0xff]  ;;  %v541_v12 = vld [vmem:[%s1669_s1 + $0x10] sm:$0xff]  ;;  %s1841_s6 = sld [smem:[#allocation21_spill]]  ;;  %s1842_s4 = sld [smem:[#allocation22_spill]] }
  0x93   : > { %944 = vmatpush3.bf16.msra.mxu0 %v943_v5  ;;  %v540_v11 = vld [vmem:[%s1669_s1 + $0x8] sm:$0xff]  ;;  %v542_v13 = vld [vmem:[%s1669_s1 + $0x18] sm:$0xff]  ;;  %v949_v14 = vpack.c.bf16 %v431_v9, %v430_v8  ;;  %v432_v16 = vld [vmem:[%s1654_s16 + $0x30] sm:$0xff]  ;;  %s417_s14 = scalar_select %p416_p10, %s1308_s30, 2 }
  0x94   : > { %945 = vmatprep.subr.bf16.mxu0 %v1332_v0  ;;  %v967_v15 = vpack.c.bf16 %v540_v11, %v539_v10  ;;  %v433_v17 = vld [vmem:[%s1654_s16 + $0x38] sm:$0xff]  ;;  %v970_v18 = vpack.c.bf16 %v542_v13, %v541_v12  ;;  %v543_v19 = vld [vmem:[%s1669_s1 + $0x20] sm:$0xff]  ;;  %v544_v20 = vld [vmem:[%s1669_s1 + $0x28] sm:$0xff]  ;;  %s414_s18 = scalar_lea.vmem [#allocation8], %s822_s8  ;;  %p830_p6 = scmp.ne.s32.totalorder %s1308_s30, 0 }
  0x95   : > { %v952_v21 = vpack.c.bf16 %v433_v17, %v432_v16  ;;  %v434_v22 = vld [vmem:[%s1654_s16 + $0x40] sm:$0xff]  ;;  %v435_v23 = vld [vmem:[%s1654_s16 + $0x48] sm:$0xff]  ;;  %v973_v24 = vpack.c.bf16 %v544_v20, %v543_v19  ;;  %v545_v25 = vld [vmem:[%s1669_s1 + $0x30] sm:$0xff] }
  0x96   : > { %968 = vmatpush3.bf16.msra.mxu1 %v967_v15  ;;  %v546_v26 = vld [vmem:[%s1669_s1 + $0x38] sm:$0xff]  ;;  %v955_v27 = vpack.c.bf16 %v435_v23, %v434_v22  ;;  %v436_v28 = vld [vmem:[%s1654_s16 + $0x50] sm:$0xff]  ;;  %v547_v31 = vld [vmem:[%s1669_s1 + $0x40] sm:$0xff] }
  0x97   : > { %947 = vmatpush3.bf16.msra.mxu0 %v946_v7  ;;  %969 = vmatprep.subr.bf16.mxu1 %v1332_v0  ;;  %v437_v29 = vld [vmem:[%s1654_s16 + $0x58] sm:$0xff]  ;;  %v976_v30 = vpack.c.bf16 %v546_v26, %v545_v25  ;;  %v548_v32 = vld [vmem:[%s1669_s1 + $0x48] sm:$0xff]  ;;  %v438_v34 = vld [vmem:[%s1654_s16 + $0x60] sm:$0xff] }
  0x98   : > { %948 = vmatprep.subr.bf16.mxu0 %v1332_v0  ;;  %v958_v33 = vpack.c.bf16 %v437_v29, %v436_v28  ;;  %v439_v35 = vld [vmem:[%s1654_s16 + $0x68] sm:$0xff]  ;;  %v979_v36 = vpack.c.bf16 %v548_v32, %v547_v31  ;;  %v549_v37 = vld [vmem:[%s1669_s1 + $0x50] sm:$0xff]  ;;  %v550_v38 = vld [vmem:[%s1669_s1 + $0x58] sm:$0xff]  ;;  %s418_s19 = scalar_lea.vmem %s1841_s6, %s417_s14  ;;  %s421_s22 = scalar_lea.vmem %s1842_s4, %s417_s14 }
  0x99   : > { %v961_v39 = vpack.c.bf16 %v439_v35, %v438_v34  ;;  %v440_v40 = vld [vmem:[%s1654_s16 + $0x70] sm:$0xff]  ;;  %v441_v41 = vld [vmem:[%s1654_s16 + $0x78] sm:$0xff]  ;;  %v982_v42 = vpack.c.bf16 %v550_v38, %v549_v37  ;;  %v551_v45 = vld [vmem:[%s1669_s1 + $0x60] sm:$0xff]  ;;  %s1844_s16 = sld [smem:[#allocation20_spill]] (!%p830_p6) }
  0x9a   : > { %971 = vmatpush3.bf16.msra.mxu1 %v970_v18  ;;  %v964_v43 = vpack.c.bf16 %v441_v41, %v440_v40  ;;  %v425_v44 = vld [vmem:[%s1646_s20] sm:$0xff]  ;;  %v552_v46 = vld [vmem:[%s1669_s1 + $0x68] sm:$0xff]  ;;  %s1843_s20 = sld [smem:[#allocation23_spill]] }
  0x9b   : > { %950 = vmatpush3.bf16.msra.mxu0 %v949_v14  ;;  %972 = vmatprep.subr.bf16.mxu1 %v1332_v0  ;;  %v985_v47 = vpack.c.bf16 %v552_v46, %v551_v45  ;;  %v553_v48 = vld [vmem:[%s1669_s1 + $0x70] sm:$0xff]  ;;  %v554_v49 = vld [vmem:[%s1669_s1 + $0x78] sm:$0xff] }
  0x9c   : > { %951 = vmatprep.subr.bf16.mxu0 %v1332_v0  ;;  %v988_v50 = vpack.c.bf16 %v554_v49, %v553_v48  ;;  %v827_v51 = vld [vmem:[%s418_s19] ss:$0 sm:$0xff] }
  0x9d   : > { %v826_v52 = vld [vmem:[%s421_s22] ss:$0 sm:$0xff] }
  0x9e   : > { %974 = vmatpush3.bf16.msra.mxu1 %v973_v24 }
  0x9f   : > { %953 = vmatpush3.bf16.msra.mxu0 %v952_v21  ;;  %975 = vmatprep.subr.bf16.mxu1 %v1332_v0  ;;  %v831_v62 = vld [vmem:[%s1844_s16] ss:$0 sm:$0xff] (!%p830_p6) }
  0xa0   : > { %954 = vmatprep.subr.bf16.mxu0 %v1332_v0  ;;  %s424_s23 = scalar_lea.vmem %s1843_s20, %s417_s14 }
  0xa1   : > { %v828_v54 = vld [vmem:[%s424_s23] ss:$0 sm:$0xff] }
  0xa2   : > { %977 = vmatpush3.bf16.msra.mxu1 %v976_v30 }
  0xa3   : > { %956 = vmatpush3.bf16.msra.mxu0 %v955_v27  ;;  %978 = vmatprep.subr.bf16.mxu1 %v1332_v0 }
  0xa4   : > { %957 = vmatprep.subr.bf16.mxu0 %v1332_v0 }
  0xa6   : > { %980 = vmatpush3.bf16.msra.mxu1 %v979_v36 }
  0xa7   : > { %959 = vmatpush3.bf16.msra.mxu0 %v958_v33  ;;  %981 = vmatprep.subr.bf16.mxu1 %v1332_v0 }
  0xa8   : > { %960 = vmatprep.subr.bf16.mxu0 %v1332_v0 }
  0xaa   : > { %983 = vmatpush3.bf16.msra.mxu1 %v982_v42 }
  0xab   : > { %962 = vmatpush3.bf16.msra.mxu0 %v961_v39  ;;  %984 = vmatprep.subr.bf16.mxu1 %v1332_v0 }
  0xac   : > { %963 = vmatprep.subr.bf16.mxu0 %v1332_v0 }
  0xae   : > { %986 = vmatpush3.bf16.msra.mxu1 %v985_v47 }
  0xaf   : > { %965 = vmatpush3.bf16.msra.mxu0 %v964_v43  ;;  %987 = vmatprep.subr.bf16.mxu1 %v1332_v0 }
  0xb2   : > { %905 = vmatmul.mubr.f32.vlgmr.msra.gmra.mrb[0].mxu0 %v425_v44  ;;  %989 = vmatpush3.bf16.msra.mxu1 %v988_v50 }
 0x185   : > { %v508_v53 = vpop.f32.mrb[0].mxu0 }
 0x186   : > { %v528_v55 = vmul.f32 %v827_v51, %v508_v53  ;;  %v906_v56 = vpop.f32.mrb[1].mxu0  ;;  %v519_v57 = vadd.f32 %v826_v52, %v508_v53 }
 0x188   : > { %v536_v58 = vadd.f32 %v828_v54, %v528_v55  ;;  %vm520_vm1 = vcmp.gt.f32.partialorder %v519_v57, 0.0 }
 0x18a   : > { %v537_v59 = vmax.f32 %v536_v58, 0.0 }
 0x18c   : > { %940 = vmatmul.mubr.msk.f32.vlgmr.msra.gmra.mrb[0].mxu1 %vm520_vm1, %v537_v59 }
 0x25a   : > { %628 = sbr.rel (%p830_p6) target bundleno = 611 (0x263), region = 64 }
 0x25f   : > { %v621_v60 = vpop.f32.mrb[0].mxu1 }
 0x260   : > { %v941_v61 = vpop.f32.mrb[1].mxu1  ;;  %v636_v63 = vadd.f32 (!%p830_p6), %v831_v62, %v621_v60 }
 0x262   : > { %637 = vst [vmem:[%s414_s18] sm:$0xff] %v636_v63 }
 0x263 PF: > { %p832_p0 = scmp.le.s32.totalorder %s1308_s30, 0 }
 0x265   : > { %641 = sbr.rel (%p832_p0) target bundleno = 621 (0x26d), region = 68 }
 0x269   : > { %v642_v0 = vld [vmem:[%s414_s18] sm:$0xff] (!%p832_p0) }
 0x26a   : > { %v643_v1 = vadd.f32 (!%p832_p0), %v642_v0, %v621_v60 }
 0x26c   : > { %644 = vst [vmem:[%s414_s18] sm:$0xff] %v643_v1 }
 0x26d PF: > { %s1845_s1 = sld [smem:[#allocation13_spill]]  ;;  %s1846_s15 = sld [smem:[#allocation24_spill]] }
 0x26e   : > { %s659_s19 = sshll.u32 %s414_s18, 4  ;;  %s646_s29 = scalar_lea.sflag [#allocation4], %s1640_s21  ;;  %s660_s19 = int_to_ptr.vmem [resolvable:$true] %s659_s19 }
 0x26f   : > { %s1198_s24 = scalar_lea.vmem %s660_s19, 128  ;;  %p1847_p13 = scmp.ne.s32.totalorder %s1830_s3, 0 }
 0x270   : > { %p1199_p3 = scmp.ne.s32.totalorder %s660_s19, %s1198_s24  ;;  %s1335_s30 = smov [#allocation8]  }
 0x271   : > { %s1202_s4 = sshll.u32 %s1335_s30, 4  ;;  %s1203_s4 = int_to_ptr.vmem [resolvable:$false] %s1202_s4 }
 0x272   : > { %p1200_p9 = pnand %p1199_p3, %p1847_p13  ;;  %s1204_s22 = scalar_lea.vmem %s1203_s4, 256 }
 0x273   : > { %s834_s8 = sshll.u32 %s1845_s1, 7  ;;  %p1205_p11 = scmp.lt.s32.totalorder %s660_s19, %s1203_s4 }
 0x274   : > { %s1733_s6 = scalar_lea.hbm %s1846_s15, %s834_s8  ;;  %p1201_p12 = pneg %p1200_p9 }
 0x275   : > { %p1206_p2 = scmp.lt.s32.totalorder %s1204_s22, %s1198_s24 }
 0x277   : > { %p1207_p1 = por %p1206_p2, %p1205_p11 }
 0x279   : > { %p1208_p5 = pnand %p1207_p1, %p1201_p12 }
 0x27b   : > { %1211 = shalt.err (!%p1208_p5)
}
 0x27c   : > { %s1212_s21 = scalar_lea.hbm %s1733_s6, 128  ;;  %s1216_s20 = scalar_lea.hbm %s1846_s15, 384 }
 0x27d   : > { %p1213_p7 = scmp.ne.s32.totalorder %s1733_s6, %s1212_s21  ;;  %p1217_p10 = scmp.lt.u32.totalorder %s1733_s6, %s1846_s15 }
 0x27e   : > { %p1218_p6 = scmp.lt.u32.totalorder %s1216_s20, %s1212_s21  ;;  %p1220_p3 = scmp.lt.u32.totalorder %s1212_s21, %s1733_s6 }
 0x27f   : > { %p1214_p8 = pnand %p1213_p7, %p1847_p13 }
 0x280   : > { %p1219_p0 = por %p1218_p6, %p1217_p10 }
 0x281   : > { %p1215_p4 = pneg %p1214_p8 }
 0x282   : > { %p1221_p9 = por %p1220_p3, %p1219_p0 }
 0x284   : > { %p1222_p12 = pnand %p1221_p9, %p1215_p4 }
 0x286   : > { %1225 = shalt.err (!%p1222_p12)
}
 0x287   : > { %996 = dma.vmem_to_hbm [thread:$0]  (%p1847_p13), %s660_s19, 128, %s1733_s6, %s646_s29  }
 0x288 PF: > { %p1013_p11 = scmp.ge.s32.totalorder %s1324_s11, 2  ;;  %s671_s5 = sand.u32 1, %s1296_s27  }
 0x289   : > { %p1848_p2 = scmp.ne.s32.totalorder %s1831_s7, 0  ;;  %s672_s17 = scalar_lea.sflag [#allocation4], %s671_s5 }
 0x28b   : > { %p1009_p1 = pnand %p1013_p11, %p1848_p2 }
 0x28d   : > { %1279 = dma.done.wait (!%p1009_p1), %s672_s17, 128  }
 0x28e   : > { %1281 = vsyncadd (!%p1009_p1), %s672_s17, 4294967168  ;;  %s26_s11 = sadd.s32 1, %s1324_s11   ;;  %s1849_s16 = sld [smem:[#allocation17_spill]] }
 0x28f   : > { %p23_p5 = scmp.ge.s32.totalorder %s26_s11, 11   ;;  %s1850_s3 = sld [smem:[#allocation12_spill]] }
 0x290   : > { %s1851_s29 = sld [smem:[#allocation18_spill]]  ;;  %s1852_s8 = sld [smem:[#allocation14_spill]] }
 0x291   : > { %s1853_s1 = sld [smem:[#allocation15_spill]]  ;;  %s1854_s10 = sld [smem:[#allocation16_spill]] }
 0x292   : > { %s1855_s24 = smov %s1288_s25  ;;  %s1856_s25 = smov %s1292_s26 }
 0x293   : > { %s1858_s27 = smov %s1300_s28  ;;  %s1860_s30 = smov %s1316_s9 }
 0x294   : > { %s1857_s26 = smov %s1849_s16  ;;  %25 = sbr.rel (!%p23_p5) target bundleno = 18 (0x12), region = 134 }
 0x295   : > { %s1859_s28 = smov %s1850_s3 }
 0x297   : > { %s1861_s9 = smov %s1853_s1 }
 0x29b   :  { %677 = vsyncpa [#allocation3], 1 }
 0x29c   :  { %679 = vsyncpa [#allocation3 + $0x1], 1 }
 0x29d   :  { %680 = vsyncpa [#allocation6], 1 }
 0x29e   :  { %682 = vsyncpa [#allocation6 + $0x1], 1 }
 0x29f   :  { %683 = vsyncpa [#allocation4], 1 }
 0x2a0   :  { %685 = vsyncpa [#allocation4 + $0x1], 1 }

</bundles_post_ra>
